<compile_context>
chip_gen: v7x
topology: tpu7x:2x2x1
jax: 0.10.0
libtpu: 0.0.40
codegen_flags: <defaults>
</compile_context>

<pallas_src>
import functools

import jax
import jax.numpy as jnp
from jax.experimental import pallas as pl
from jax.experimental.pallas import tpu as pltpu


# ------------------------- per-generation VMEM budget -------------------------
def _tpu_vmem_capacity_bytes():
    # v5e/v6e: 128 MiB physical, v7x: 64 MiB per TensorCore.  Fall back to the
    # smallest (v7x) figure if the query is unavailable so tiles stay legal
    # on every generation.
    try:
        return int(pltpu.get_tpu_info().vmem_capacity_bytes)
    except Exception:
        return 64 * 1024 * 1024


_VMEM_CAP = _tpu_vmem_capacity_bytes()
# Scoped limit handed to the compiler: leave headroom for internal scratch.
_VMEM_LIMIT = max(min(int(_VMEM_CAP * 0.70), _VMEM_CAP - (8 << 20)), 16 << 20)
# Budget for the buffers *we* size explicitly (double-buffered blocks + scratch).
_TILE_BUDGET = int(_VMEM_CAP * 0.45)


def _row_tile(n, bytes_per_row, budget, cap=4096):
    """Largest row tile (full array, or 8-aligned) whose working set fits."""
    max_rows = min(cap, max(8, budget // max(bytes_per_row, 1)))
    if n <= max_rows:
        return n                       # full-array block is always legal
    return max(8, (max_rows // 8) * 8)


def _lane_tile(d, cap):
    """Lane tile: 128-aligned when possible, otherwise the full dim."""
    if d % 128 != 0 or d <= cap:
        return d
    return cap


# ----------------------- Fused PreNorm + Linear kernel -----------------------
def _prenorm_linear_kernel(x_ref, w_ref, b_ref, o_ref, y_ref, *, eps, inv_d):
    # LayerNorm hoisted out of the output-column loop: compute the normalized
    # row tile once (j == 0) into a persistent VMEM scratch; the MXU re-uses
    # it for every output-column tile j.  The x block index is j-invariant so
    # Pallas does not re-DMA x across j either.
    @pl.when(pl.program_id(1) == 0)
    def _():
        x = x_ref[...].astype(jnp.float32)                       # (tm, D)
        mean = jnp.sum(x, axis=-1, keepdims=True) * inv_d
        xc = x - mean                                            # two-pass var
        var = jnp.sum(xc * xc, axis=-1, keepdims=True) * inv_d
        y_ref[...] = (xc * jax.lax.rsqrt(var + eps)).astype(y_ref.dtype)

    acc = jnp.dot(y_ref[...], w_ref[...], preferred_element_type=jnp.float32)
    o_ref[...] = (acc + b_ref[...].astype(jnp.float32)).astype(o_ref.dtype)


def prenorm_linear(x, gamma, beta, w, b, *, eps=1e-5):
    """Fused LayerNorm(x) @ W + b, with the LN affine folded into (W, b)."""
    orig_shape = x.shape
    D = orig_shape[-1]
    D_out = w.shape[-1]
    x2 = x.reshape(-1, D)
    N = x2.shape[0]

    # Fold gamma/beta into the weights (outside the kernel):
    #   (LNhat(x)*gamma + beta) @ W + b == LNhat(x) @ (gamma[:,None]*W) + (beta@W + b)
    w_f32 = w.astype(jnp.float32)
    w_fold = (gamma.astype(jnp.float32)[:, None] * w_f32).astype(w.dtype)
    b_fold = (beta.astype(jnp.float32) @ w_f32
              + b.astype(jnp.float32)).reshape(1, D_out)

    x_is = jnp.dtype(x.dtype).itemsize
    w_is = jnp.dtype(w.dtype).itemsize
    o_is = x_is

    # Output-lane tile: lane-dense (multiple of 128) when possible; shrink it
    # if the double-buffered (D, tn) weight strip would eat the budget.
    tn = _lane_tile(D_out, 512)
    while D_out % 128 == 0 and tn > 128 and 2 * D * tn * w_is > _TILE_BUDGET // 2:
        tn //= 2
    w_fixed = 2 * D * tn * w_is + 2 * tn * 4
    # Per-row cost: x (double-buffered) + out (double-buffered) + LN scratch
    # + f32 temporaries.  Large tm also shrinks the weight re-read factor
    # (W is re-streamed once per row tile with j innermost).
    per_row = D * (2 * x_is + w_is + 4) + 2 * tn * o_is
    tm = _row_tile(N, per_row, max(_TILE_BUDGET - w_fixed, 8 * per_row))
    # TODO(synk): for very large D (row/weight strips that do not fit VMEM
    # even at tm=8 / tn=128) this kernel needs an extra K grid axis over D.

    grid = (pl.cdiv(N, tm), pl.cdiv(D_out, tn))
    n_row_tiles = grid[0]

    cost = pl.CostEstimate(
        flops=2 * N * D * D_out + 7 * N * D,
        transcendentals=N,
        bytes_accessed=(x2.size * x_is + N * D_out * o_is
                        + n_row_tiles * w_fold.size * w_is
                        + b_fold.size * 4),
    )

    out = pl.pallas_call(
        functools.partial(_prenorm_linear_kernel, eps=eps, inv_d=1.0 / D),
        out_shape=jax.ShapeDtypeStruct((N, D_out), x.dtype),
        grid_spec=pltpu.PrefetchScalarGridSpec(
            num_scalar_prefetch=0,
            grid=grid,
            in_specs=[
                pl.BlockSpec((tm, D), lambda i, j: (i, 0)),    # x rows (j-invariant)
                pl.BlockSpec((D, tn), lambda i, j: (0, j)),    # folded weight strip
                pl.BlockSpec((1, tn), lambda i, j: (0, j)),    # folded bias
            ],
            out_specs=pl.BlockSpec((tm, tn), lambda i, j: (i, j)),
            scratch_shapes=[pltpu.VMEM((tm, D), w.dtype)],     # normalized rows
        ),
        compiler_params=pltpu.CompilerParams(
            # j must iterate sequentially (LN scratch reused across j);
            # i row tiles are independent -> parallel (megacore sharding).
            dimension_semantics=("parallel", "arbitrary"),
            vmem_limit_bytes=_VMEM_LIMIT),
        cost_estimate=cost,
    )(x2, w_fold, b_fold)
    return out.reshape(orig_shape[:-1] + (D_out,))


# --------------------------- Standalone LayerNorm ----------------------------
def _layernorm_kernel(x_ref, gamma_ref, beta_ref, o_ref, *, eps, inv_d):
    x = x_ref[...].astype(jnp.float32)
    mean = jnp.sum(x, axis=-1, keepdims=True) * inv_d
    xc = x - mean
    var = jnp.sum(xc * xc, axis=-1, keepdims=True) * inv_d
    y = xc * jax.lax.rsqrt(var + eps)
    y = y * gamma_ref[...].astype(jnp.float32) + beta_ref[...].astype(jnp.float32)
    o_ref[...] = y.astype(o_ref.dtype)


def layernorm(x, gamma, beta, *, eps=1e-5):
    """LayerNorm over the last dim of x (generic path for arbitrary fn)."""
    orig_shape = x.shape
    D = orig_shape[-1]
    x2 = x.reshape(-1, D)
    N = x2.shape[0]
    x_is = jnp.dtype(x.dtype).itemsize

    # LN is HBM-bandwidth bound: use the largest row tile the budget allows
    # (big tiles amortize the ~0.35 us per-grid-step overhead on every gen).
    per_row = D * (4 * x_is + 4)      # x + out double-buffered + f32 temps
    tm = _row_tile(N, per_row, _TILE_BUDGET, cap=4096)

    out = pl.pallas_call(
        functools.partial(_layernorm_kernel, eps=eps, inv_d=1.0 / D),
        out_shape=jax.ShapeDtypeStruct((N, D), x.dtype),
        grid_spec=pltpu.PrefetchScalarGridSpec(
            num_scalar_prefetch=0,
            grid=(pl.cdiv(N, tm),),
            in_specs=[
                pl.BlockSpec((tm, D), lambda i: (i, 0)),
                pl.BlockSpec((1, D), lambda i: (0, 0)),
                pl.BlockSpec((1, D), lambda i: (0, 0)),
            ],
            out_specs=pl.BlockSpec((tm, D), lambda i: (i, 0)),
        ),
        compiler_params=pltpu.CompilerParams(
            dimension_semantics=("parallel",),
            vmem_limit_bytes=_VMEM_LIMIT),
    )(x2, gamma.reshape(1, D), beta.reshape(1, D))
    return out.reshape(orig_shape)


# -------------------- Standalone tiled Linear (generic fn) -------------------
def _linear_kernel(x_ref, w_ref, b_ref, o_ref, acc_ref):
    @pl.when(pl.program_id(2) == 0)
    def _():
        acc_ref[...] = jnp.zeros_like(acc_ref)

    # Cast activations to the weight dtype -> bf16 MXU path with bf16 weights
    # (f32 accumulation either way).
    acc_ref[...] += jnp.dot(x_ref[...].astype(w_ref.dtype), w_ref[...],
                            preferred_element_type=jnp.float32)

    @pl.when(pl.program_id(2) == pl.num_programs(2) - 1)
    def _():
        o_ref[...] = (acc_ref[...] + b_ref[...].astype(jnp.float32)).astype(o_ref.dtype)


def linear(x, w, b):
    """x: [..., D_in] @ w[D_in, D_out] + b[D_out] — canonical tiled matmul."""
    orig_shape = x.shape
    D_in = orig_shape[-1]
    D_out = w.shape[-1]
    x2 = x.reshape(-1, D_in)
    N = x2.shape[0]
    b2 = b.reshape(1, D_out)

    tm = N if N <= 256 else 256
    tn = _lane_tile(D_out, 256)
    # K tile: largest power-of-two that divides D_in exactly (exact
    # divisibility keeps every accumulation block in-bounds); full K only as
    # a last resort.
    tk = D_in
    for cand in (2048, 1024, 512, 256, 128):
        if D_in % cand == 0:
            tk = cand
            break
    grid = (pl.cdiv(N, tm), pl.cdiv(D_out, tn), pl.cdiv(D_in, tk))

    out = pl.pallas_call(
        _linear_kernel,
        out_shape=jax.ShapeDtypeStruct((N, D_out), x.dtype),
        grid_spec=pltpu.PrefetchScalarGridSpec(
            num_scalar_prefetch=0,
            grid=grid,
            in_specs=[
                pl.BlockSpec((tm, tk), lambda i, j, k: (i, k)),
                pl.BlockSpec((tk, tn), lambda i, j, k: (k, j)),
                pl.BlockSpec((1, tn), lambda i, j, k: (0, j)),
            ],
            out_specs=pl.BlockSpec((tm, tn), lambda i, j, k: (i, j)),
            scratch_shapes=[pltpu.VMEM((tm, tn), jnp.float32)],
        ),
        compiler_params=pltpu.CompilerParams(
            dimension_semantics=("parallel", "parallel", "arbitrary"),
            vmem_limit_bytes=_VMEM_LIMIT),
    )(x2, w, b2)
    return out.reshape(orig_shape[:-1] + (D_out,))


# ---------------------------------- PreNorm ----------------------------------
class PallasLinear:
    """Linear fn wrapper that PreNorm can fuse with its LayerNorm."""

    def __init__(self, w, b):
        self.w = w
        self.b = b

    def __call__(self, x):
        return linear(x, self.w, self.b)


class PreNorm:
    """Mirrors torch: self.fn(self.norm(x), **kwargs)."""

    def __init__(self, dim, fn):
        # nn.LayerNorm(dim) default init: weight=1, bias=0, eps=1e-5.
        self.gamma = jnp.ones((dim,), jnp.float32)
        self.beta = jnp.zeros((dim,), jnp.float32)
        self.eps = 1e-5
        self.fn = fn

    def __call__(self, x, **kwargs):
        # Fast path: LayerNorm + Linear fused in one kernel (normalized
        # intermediate never round-trips through HBM; LN affine folded into W).
        if isinstance(self.fn, PallasLinear) and not kwargs:
            return prenorm_linear(x, self.gamma, self.beta,
                                  self.fn.w, self.fn.b, eps=self.eps)
        # Generic path: tiled LayerNorm kernel, then arbitrary fn.
        return self.fn(layernorm(x, self.gamma, self.beta, eps=self.eps), **kwargs)


if __name__ == "__main__":
    # Lane-dense (128-aligned) feature dims so output stores are full vst,
    # while keeping the overall problem small.
    B, S, D, D_OUT = 2, 8, 128, 128

    key = jax.random.PRNGKey(0)
    kx, kw, kb = jax.random.split(key, 3)
    x = jax.random.normal(kx, (B, S, D), dtype=jnp.float32)
    w = jax.random.normal(kw, (D, D_OUT), dtype=jnp.float32) * 0.02
    b = jax.random.normal(kb, (D_OUT,), dtype=jnp.float32) * 0.02

    # Fused PreNorm(LayerNorm -> Linear).
    prenorm_fused = PreNorm(D, PallasLinear(w, b))
    out_fused = jax.block_until_ready(prenorm_fused(x))

    # Generic (unfused) path with an arbitrary callable fn, for completeness.
    prenorm_generic = PreNorm(D, lambda h: linear(h, w, b))
    out_generic = jax.block_until_ready(prenorm_generic(x))

    # Pure-JAX reference.
    mean = jnp.mean(x, axis=-1, keepdims=True)
    var = jnp.mean((x - mean) ** 2, axis=-1, keepdims=True)
    ln_ref = (x - mean) / jnp.sqrt(var + 1e-5)
    ref = ln_ref @ w + b

    assert out_fused.shape == (B, S, D_OUT)
    assert out_generic.shape == (B, S, D_OUT)
    assert jnp.allclose(out_fused, ref, atol=1e-4, rtol=1e-4), "fused mismatch"
    assert jnp.allclose(out_generic, ref, atol=1e-4, rtol=1e-4), "generic mismatch"

    print("KERNEL_OK")
</pallas_src>

<mosaic_0001>
module attributes {stable_mosaic.version = 11 : i64} {
  func.func @_prenorm_linear_kernel(%arg0: i32, %arg1: i32, %arg2: memref<16x128xf32, #tpu.memory_space<vmem>>, %arg3: memref<128x128xf32, #tpu.memory_space<vmem>>, %arg4: memref<1x128xf32, #tpu.memory_space<vmem>>, %arg5: memref<16x128xf32, #tpu.memory_space<vmem>>, %arg6: memref<16x128xf32, #tpu.memory_space<vmem>>) attributes {dimension_semantics = [#tpu.dimension_semantics<parallel>, #tpu.dimension_semantics<arbitrary>], iteration_bounds = array<i64: 1, 1>, scalar_prefetch = 0 : i64, scratch_operands = 1 : i64, tpu.core_type = #tpu.core_type<tc>, window_params = [{transform_indices = @transform_0, window_bounds = array<i64: 16, 128>}, {transform_indices = @transform_1, window_bounds = array<i64: 128, 128>}, {transform_indices = @transform_2, window_bounds = array<i64: 1, 128>}, {transform_indices = @transform_3, window_bounds = array<i64: 16, 128>}]} {
    %c0_i32 = arith.constant 0 : i32
    %0 = arith.cmpi eq, %arg1, %c0_i32 : i32
    %1 = arith.extui %0 : i1 to i32
    %c0_i32_0 = arith.constant 0 : i32
    %2 = arith.cmpi ne, %1, %c0_i32_0 : i32
    scf.if %2 {
      %c0_8 = arith.constant 0 : index
      %c0_9 = arith.constant 0 : index
      %10 = vector.load %arg2[%c0_8, %c0_9] : memref<16x128xf32, #tpu.memory_space<vmem>>, vector<16x128xf32>
      %cst_10 = arith.constant dense<0.000000e+00> : vector<16xf32>
      %11 = vector.multi_reduction <add>, %10, %cst_10 [1] : vector<16x128xf32> to vector<16xf32>
      %12 = vector.shape_cast %11 : vector<16xf32> to vector<16x1xf32>
      %cst_11 = arith.constant 7.812500e-03 : f32
      %13 = vector.broadcast %cst_11 : f32 to vector<16x1xf32>
      %14 = arith.mulf %12, %13 : vector<16x1xf32>
      %15 = vector.broadcast %14 : vector<16x1xf32> to vector<16x128xf32>
      %16 = arith.subf %10, %15 : vector<16x128xf32>
      %17 = arith.mulf %16, %16 : vector<16x128xf32>
      %cst_12 = arith.constant dense<0.000000e+00> : vector<16xf32>
      %18 = vector.multi_reduction <add>, %17, %cst_12 [1] : vector<16x128xf32> to vector<16xf32>
      %19 = vector.shape_cast %18 : vector<16xf32> to vector<16x1xf32>
      %cst_13 = arith.constant 7.812500e-03 : f32
      %20 = vector.broadcast %cst_13 : f32 to vector<16x1xf32>
      %21 = arith.mulf %19, %20 : vector<16x1xf32>
      %cst_14 = arith.constant 9.99999974E-6 : f32
      %22 = vector.broadcast %cst_14 : f32 to vector<16x1xf32>
      %23 = arith.addf %21, %22 : vector<16x1xf32>
      %24 = math.rsqrt %23 : vector<16x1xf32>
      %25 = vector.broadcast %24 : vector<16x1xf32> to vector<16x128xf32>
      %26 = arith.mulf %16, %25 : vector<16x128xf32>
      %c0_15 = arith.constant 0 : index
      %c0_16 = arith.constant 0 : index
      %27 = vector.load %arg6[%c0_15, %c0_16] : memref<16x128xf32, #tpu.memory_space<vmem>>, vector<16x128xf32>
      tpu.vector_store %arg6[%c0_15, %c0_16], %26 {strides = array<i32>} : memref<16x128xf32, #tpu.memory_space<vmem>>, vector<16x128xf32>,
    } else {
    }
    %c0 = arith.constant 0 : index
    %c0_1 = arith.constant 0 : index
    %3 = vector.load %arg6[%c0, %c0_1] : memref<16x128xf32, #tpu.memory_space<vmem>>, vector<16x128xf32>
    %c0_2 = arith.constant 0 : index
    %c0_3 = arith.constant 0 : index
    %4 = vector.load %arg3[%c0_2, %c0_3] : memref<128x128xf32, #tpu.memory_space<vmem>>, vector<128x128xf32>
    %cst = arith.constant dense<0.000000e+00> : vector<16x128xf32>
    %5 = tpu.matmul %3, %4, %cst {dimension_numbers = #tpu.dot_dimension_numbers<[1], [0], [0], [1], [0, 0, 1, 1], [], []>} : vector<16x128xf32>, vector<128x128xf32>, vector<16x128xf32> -> vector<16x128xf32>
    %c0_4 = arith.constant 0 : index
    %c0_5 = arith.constant 0 : index
    %6 = vector.load %arg4[%c0_4, %c0_5] : memref<1x128xf32, #tpu.memory_space<vmem>>, vector<1x128xf32>
    %7 = vector.broadcast %6 : vector<1x128xf32> to vector<16x128xf32>
    %8 = arith.addf %5, %7 : vector<16x128xf32>
    %c0_6 = arith.constant 0 : index
    %c0_7 = arith.constant 0 : index
    %9 = vector.load %arg5[%c0_6, %c0_7] : memref<16x128xf32, #tpu.memory_space<vmem>>, vector<16x128xf32>
    tpu.vector_store %arg5[%c0_6, %c0_7], %8 {strides = array<i32>} : memref<16x128xf32, #tpu.memory_space<vmem>>, vector<16x128xf32>,
    return
  }
  func.func @transform_0(%arg0: i32, %arg1: i32) -> (i32, i32) {
    %c0_i32 = arith.constant 0 : i32
    %c0_i32_0 = arith.constant 0 : i32
    return %arg0, %c0_i32 : i32, i32
  }
  func.func @transform_1(%arg0: i32, %arg1: i32) -> (i32, i32) {
    %c0_i32 = arith.constant 0 : i32
    %c0_i32_0 = arith.constant 0 : i32
    return %c0_i32, %arg1 : i32, i32
  }
  func.func @transform_2(%arg0: i32, %arg1: i32) -> (i32, i32) {
    %c0_i32 = arith.constant 0 : i32
    %c0_i32_0 = arith.constant 0 : i32
    return %c0_i32, %arg1 : i32, i32
  }
  func.func @transform_3(%arg0: i32, %arg1: i32) -> (i32, i32) {
    %c0_i32 = arith.constant 0 : i32
    return %arg0, %arg1 : i32, i32
  }
}

</mosaic_0001>

<bundles_post_ra>
// kernel: tpu_custom_call.1
= control target key start
LH: loop header
LB: loop body
LE: loop exit
PB: predicated region body
PF: predicated region fallthrough
CT: control target
= control target key end

     0   :  { %8 = vsyncpa [#allocation4], 0  ;;  %s433_s0 = inlined_call_operand.hbm [shape: f32[16,128], index: 0, kind: input, shape index: {}]   ;;  %s434_s1 = inlined_call_operand.hbm [shape: f32[128,128], index: 1, kind: input, shape index: {}]   ;;  %s435_s2 = inlined_call_operand.vmem [shape: f32[1,128], index: 2, kind: input, shape index: {}]   ;;  %s436_s3 = inlined_call_operand.hbm [shape: f32[16,128], index: 3, kind: output, shape index: {}]  }
   0x1   :  { %9 = vsyncpa [#allocation7], 0 }
   0x2   :  { %10 = vsyncpa [#allocation5], 0  ;;  %s360_s12 = smov [#allocation3]   ;;  %s288_s16 = scalar_lea.hbm %s433_s0, 256 }
   0x3   :  { %s16_s13 = sshll.u32 %s360_s12, 4  ;;  %p289_p0 = scmp.ne.s32.totalorder %s433_s0, %s288_s16  ;;  %s17_s13 = int_to_ptr.vmem [resolvable:$true] %s16_s13 }
   0x4   :  { %p292_p1 = scmp.lt.u32.totalorder %s288_s16, %s433_s0 }
   0x6   :  { %p294_p2 = pnand %p292_p1, %p289_p0 }
   0x8   :  { %297 = shalt.err (!%p294_p2)
}
   0x9   :  { %s298_s21 = scalar_lea.vmem %s17_s13, 256  ;;  %p303_p4 = scmp.lt.s32.totalorder %s17_s13, %s17_s13 }
   0xa   :  { %p299_p3 = scmp.ne.s32.totalorder %s17_s13, %s298_s21  ;;  %p304_p5 = scmp.lt.s32.totalorder %s298_s21, %s298_s21 }
   0xc   :  { %p305_p6 = por %p304_p5, %p303_p4 }
   0xe   :  { %p306_p7 = pnand %p305_p6, %p299_p3 }
  0x10   :  { %309 = shalt.err (!%p306_p7)
}
  0x11   :  { %s361_s22 = smov 128   ;;  %s362_s23 = smov 8  }
  0x12   :  { %22 = dma.hbm_to_vmem [thread:$0]  %s433_s0, 256, %s17_s13, [#allocation4], %s361_s22, %s361_s22, %s362_s23  }
  0x13   :  { %s363_s26 = smov [#allocation6]   ;;  %s310_s30 = scalar_lea.hbm %s434_s1, 2048 }
  0x14   :  { %s28_s27 = sshll.u32 %s363_s26, 4  ;;  %p311_p8 = scmp.ne.s32.totalorder %s434_s1, %s310_s30  ;;  %s29_s27 = int_to_ptr.vmem [resolvable:$true] %s28_s27 }
  0x15   :  { %p314_p9 = scmp.lt.u32.totalorder %s310_s30, %s434_s1 }
  0x17   :  { %p316_p10 = pnand %p314_p9, %p311_p8 }
  0x19   :  { %319 = shalt.err (!%p316_p10)
}
  0x1a   :  { %s320_s8 = scalar_lea.vmem %s29_s27, 2048  ;;  %p325_p12 = scmp.lt.s32.totalorder %s29_s27, %s29_s27 }
  0x1b   :  { %p321_p11 = scmp.ne.s32.totalorder %s29_s27, %s320_s8  ;;  %p326_p13 = scmp.lt.s32.totalorder %s320_s8, %s320_s8 }
  0x1d   :  { %p327_p0 = por %p326_p13, %p325_p12 }
  0x1f   :  { %p328_p1 = pnand %p327_p0, %p321_p11 }
  0x21   :  { %331 = shalt.err (!%p328_p1)
}
  0x22   :  { %34 = dma.hbm_to_vmem [thread:$0]  %s434_s1, 2048, %s29_s27, [#allocation7], %s361_s22, %s361_s22, %s362_s23  }
  0x23   :  { %354 = dma.done.wait [#allocation4], 256  }
  0x24   :  { %355 = vsyncadd [#allocation4], 4294967040 }
  0x25   :  { %356 = dma.done.wait [#allocation7], 2048  }
  0x26   :  { %357 = vsyncadd [#allocation7], 4294965248  ;;  %v47_v0 = vld [vmem:[#allocation3] sm:$0xff]  ;;  %v48_v1 = vld [vmem:[#allocation3 + $0x8] sm:$0xff]  ;;  %s364_s11 = smov [#allocation8]  }
  0x27   :  { %49 = vadd.xlane.f32.xlu0 %v47_v0  ;;  %v75_v2 = vld [vmem:[#allocation6] sm:$0xff]  ;;  %v76_v3 = vld [vmem:[#allocation6 + $0x8] sm:$0xff]  ;;  %v77_v4 = vld [vmem:[#allocation6 + $0x10] sm:$0xff]  ;;  %s180_s12 = sshll.u32 %s364_s11, 4  ;;  %s181_s12 = int_to_ptr.vmem [resolvable:$true] %s180_s12 }
  0x28   :  { %v247_v5 = vpack.c.bf16 %v76_v3, %v75_v2  ;;  %v78_v6 = vld [vmem:[#allocation6 + $0x18] sm:$0xff]  ;;  %v79_v8 = vld [vmem:[#allocation6 + $0x20] sm:$0xff]  ;;  %v80_v9 = vld [vmem:[#allocation6 + $0x28] sm:$0xff]  ;;  %s332_s13 = scalar_lea.vmem %s181_s12, 256  ;;  %p337_p3 = scmp.lt.s32.totalorder %s181_s12, %s181_s12 }
  0x29   :  { %v251_v7 = vpack.c.bf16 %v78_v6, %v77_v4  ;;  %v255_v10 = vpack.c.bf16 %v80_v9, %v79_v8  ;;  %v81_v19 = vld [vmem:[#allocation6 + $0x30] sm:$0xff]  ;;  %v82_v20 = vld [vmem:[#allocation6 + $0x38] sm:$0xff]  ;;  %v83_v22 = vld [vmem:[#allocation6 + $0x40] sm:$0xff]  ;;  %p333_p2 = scmp.ne.s32.totalorder %s181_s12, %s332_s13  ;;  %p338_p4 = scmp.lt.s32.totalorder %s332_s13, %s332_s13 }
  0x2a   :  { %248 = vmatprep.subr.bf16.mxu0 %v247_v5  ;;  %v259_v21 = vpack.c.bf16 %v82_v20, %v81_v19  ;;  %v84_v23 = vld [vmem:[#allocation6 + $0x48] sm:$0xff]  ;;  %v85_v25 = vld [vmem:[#allocation6 + $0x50] sm:$0xff]  ;;  %v86_v26 = vld [vmem:[#allocation6 + $0x58] sm:$0xff] }
  0x2b   :  { %51 = vadd.xlane.f32.xlu0 %v48_v1  ;;  %250 = vmatpush3.bf16.msra.mxu0 %v247_v5  ;;  %v263_v24 = vpack.c.bf16 %v84_v23, %v83_v22  ;;  %v267_v27 = vpack.c.bf16 %v86_v26, %v85_v25  ;;  %v87_v28 = vld [vmem:[#allocation6 + $0x60] sm:$0xff]  ;;  %v88_v29 = vld [vmem:[#allocation6 + $0x68] sm:$0xff]  ;;  %v89_v30 = vld [vmem:[#allocation6 + $0x70] sm:$0xff]  ;;  %p339_p5 = por %p338_p4, %p337_p3 }
  0x2c   :  { %252 = vmatprep.subr.bf16.mxu0 %v251_v7  ;;  %v271_v31 = vpack.c.bf16 %v88_v29, %v87_v28  ;;  %v90_v32 = vld [vmem:[#allocation6 + $0x78] sm:$0xff]  ;;  %v193_v44 = vld [vmem:[%s435_s2] ss:$0 sm:$0xff] }
  0x2d   :  { %v275_v33 = vpack.c.bf16 %v90_v32, %v89_v30  ;;  %p340_p6 = pnand %p339_p5, %p333_p2 }
  0x2f   :  { %254 = vmatpush3.bf16.msra.mxu0 %v251_v7 }
  0x30   :  { %256 = vmatprep.subr.bf16.mxu0 %v255_v10 }
  0x33   :  { %258 = vmatpush3.bf16.msra.mxu0 %v255_v10 }
  0x34   :  { %260 = vmatprep.subr.bf16.mxu0 %v259_v21 }
  0x37   :  { %262 = vmatpush3.bf16.msra.mxu0 %v259_v21 }
  0x38   :  { %264 = vmatprep.subr.bf16.mxu0 %v263_v24 }
  0x3b   :  { %266 = vmatpush3.bf16.msra.mxu0 %v263_v24 }
  0x3c   :  { %268 = vmatprep.subr.bf16.mxu0 %v267_v27 }
  0x3f   :  { %270 = vmatpush3.bf16.msra.mxu0 %v267_v27 }
  0x40   :  { %272 = vmatprep.subr.bf16.mxu0 %v271_v31 }
  0x43   :  { %274 = vmatpush3.bf16.msra.mxu0 %v271_v31 }
  0x44   :  { %276 = vmatprep.subr.bf16.mxu0 %v275_v33 }
  0x47   :  { %278 = vmatpush3.bf16.msra.mxu0 %v275_v33 }
  0xb4   :  { %v50_v11 = vpop.xlane.xlu0 %49 }
  0xb5   :  { %v53_v12 = vmul.f32 0.0078125, %v50_v11 }
  0xb7   :  { %v55_v13 = vsub.f32 %v47_v0, %v53_v12 }
  0xb8   :  { %v52_v14 = vpop.xlane.xlu0 %51 }
  0xb9   :  { %v54_v15 = vmul.f32 0.0078125, %v52_v14  ;;  %v57_v16 = vmul.f32 %v55_v13, %v55_v13 }
  0xbb   :  { %v56_v17 = vsub.f32 %v48_v1, %v54_v15  ;;  %59 = vadd.xlane.f32.xlu1 %v57_v16 }
  0xbd   :  { %v58_v18 = vmul.f32 %v56_v17, %v56_v17 }
  0xbf   :  { %61 = vadd.xlane.f32.xlu1 %v58_v18 }
 0x148   :  { %v60_v34 = vpop.xlane.xlu1 %59 }
 0x149   :  { %v63_v35 = vmul.f32 0.0078125, %v60_v34 }
 0x14b   :  { %v65_v36 = vadd.f32 1e-05, %v63_v35 }
 0x14c   :  { %v62_v37 = vpop.xlane.xlu1 %61 }
 0x14d   :  { %284 = vrsqrt.f32 %v65_v36  ;;  %v64_v38 = vmul.f32 0.0078125, %v62_v37 }
 0x14f   :  { %v66_v39 = vadd.f32 1e-05, %v64_v38 }
 0x151   :  { %286 = vrsqrt.f32 %v66_v39 }
 0x157   :  { %v285_v40 = vpop.eup %284 }
 0x158   :  { %v69_v41 = vmul.f32 %v285_v40, %v55_v13 }
 0x15a   :  { %244 = vmatprep.mubr.f32.mxu0 %v69_v41 }
 0x15b   :  { %v287_v42 = vpop.eup %286 }
 0x15c   :  { %v70_v43 = vmul.f32 %v287_v42, %v56_v17 }
 0x15e   :  { %245 = vmatmul.mubr.f32.vlgmr.msra.gmra.mrb[0].mxu0 %v70_v43 }
 0x231   :  { %v246_v45 = vpop.f32.mrb[0].mxu0 }
 0x232   :  { %v170_v46 = vadd.f32 %v246_v45, %v193_v44  ;;  %v164_v47 = vpop.f32.mrb[1].mxu0 }
 0x233   :  { %v165_v48 = vadd.f32 %v193_v44, %v164_v47 }
 0x234   :  { %174 = vst [vmem:[#allocation8 + $0x8] sm:$0xff] %v170_v46 }
 0x235   :  { %173 = vst [vmem:[#allocation8] sm:$0xff] %v165_v48 }
 0x236   :  { %343 = shalt.err (!%p340_p6)
}
 0x237   :  { %s344_s2 = scalar_lea.hbm %s436_s3, 256 }
 0x238   :  { %p345_p7 = scmp.ne.s32.totalorder %s436_s3, %s344_s2  ;;  %p348_p8 = scmp.lt.u32.totalorder %s344_s2, %s436_s3 }
 0x23a   :  { %p350_p9 = pnand %p348_p8, %p345_p7 }
 0x23c   :  { %353 = shalt.err (!%p350_p9)
}
 0x23d   :  { %186 = dma.vmem_to_hbm [thread:$0]  %s181_s12, 256, %s436_s3, [#allocation5], %s361_s22, %s361_s22, %s362_s23  }
 0x23e   :  { %358 = dma.done.wait [#allocation5], 256  }
 0x23f   :  { %359 = vsyncadd [#allocation5], 4294967040 }
 0x240   :  { %190 = vsyncpa [#allocation4], 1 }
 0x241   :  { %191 = vsyncpa [#allocation7], 1 }
 0x242   :  { %192 = vsyncpa [#allocation5], 1 }

</bundles_post_ra>
